<compile_context>
chip_gen: v7x
topology: tpu7x:2x2x1
jax: 0.10.0
libtpu: 0.0.40
codegen_flags: <defaults>
</compile_context>

<pallas_src>
from functools import partial

import jax
import jax.numpy as jnp
from jax.experimental import pallas as pl
from jax.experimental.pallas import tpu as pltpu


# ------------------------------ helpers ------------------------------------ #

def _round_up(x, m):
    return ((x + m - 1) // m) * m


# --------------------------- tiled linear kernel ---------------------------- #

def _matmul_kernel(x_ref, w_ref, o_ref, acc_ref):
    @pl.when(pl.program_id(2) == 0)
    def _():
        acc_ref[...] = jnp.zeros_like(acc_ref)
    acc_ref[...] += jnp.dot(x_ref[...], w_ref[...],
                            preferred_element_type=jnp.float32)
    @pl.when(pl.program_id(2) == pl.num_programs(2) - 1)
    def _():
        o_ref[...] = acc_ref[...].astype(o_ref.dtype)


def _matmul_bias_kernel(x_ref, w_ref, b_ref, o_ref, acc_ref):
    @pl.when(pl.program_id(2) == 0)
    def _():
        acc_ref[...] = jnp.zeros_like(acc_ref)
    acc_ref[...] += jnp.dot(x_ref[...], w_ref[...],
                            preferred_element_type=jnp.float32)
    @pl.when(pl.program_id(2) == pl.num_programs(2) - 1)
    def _():
        o_ref[...] = (acc_ref[...] + b_ref[...]).astype(o_ref.dtype)


def pallas_linear(x2d, w_t, b=None, *, out_dtype=jnp.float32,
                  tm=256, tn=256, tk=512):
    """y = x2d @ w_t (+ b).  w_t is pre-transposed to (Din, Dout), bf16.

    Tiled / pipelined matmul: tm,tn,tk are multiples of (8,128) (also 128-
    aligned for v5e's 4x128x128 MXU); inputs are zero-padded to tile multiples
    and the result is sliced back.  Per-step VMEM footprint ~2 MiB, safe on
    v5e/v6e (128 MiB) and v7x (64 MiB).
    """
    M, K = x2d.shape
    K2, N = w_t.shape
    assert K == K2, (K, K2)

    tm = min(tm, _round_up(M, 8))
    tn = min(tn, _round_up(N, 128))
    tk = min(tk, _round_up(K, 128))
    Mp, Np, Kp = _round_up(M, tm), _round_up(N, tn), _round_up(K, tk)

    xb = x2d.astype(jnp.bfloat16)
    wb = w_t.astype(jnp.bfloat16)
    if (Mp, Kp) != (M, K):
        xb = jnp.pad(xb, ((0, Mp - M), (0, Kp - K)))
    if (Kp, Np) != (K, N):
        wb = jnp.pad(wb, ((0, Kp - K), (0, Np - N)))

    grid = (Mp // tm, Np // tn, Kp // tk)
    x_spec = pl.BlockSpec((tm, tk), lambda i, j, k: (i, k))
    w_spec = pl.BlockSpec((tk, tn), lambda i, j, k: (k, j))
    o_spec = pl.BlockSpec((tm, tn), lambda i, j, k: (i, j))
    scratch = [pltpu.VMEM((tm, tn), jnp.float32)]
    cparams = pltpu.CompilerParams(
        dimension_semantics=("parallel", "parallel", "arbitrary"))

    if b is None:
        out = pl.pallas_call(
            _matmul_kernel,
            out_shape=jax.ShapeDtypeStruct((Mp, Np), out_dtype),
            grid=grid,
            in_specs=[x_spec, w_spec],
            out_specs=o_spec,
            scratch_shapes=scratch,
            compiler_params=cparams,
        )(xb, wb)
    else:
        b2 = jnp.asarray(b, jnp.float32).reshape(1, N)
        if Np != N:
            b2 = jnp.pad(b2, ((0, 0), (0, Np - N)))
        out = pl.pallas_call(
            _matmul_bias_kernel,
            out_shape=jax.ShapeDtypeStruct((Mp, Np), out_dtype),
            grid=grid,
            in_specs=[x_spec, w_spec,
                      pl.BlockSpec((1, tn), lambda i, j, k: (0, j))],
            out_specs=o_spec,
            scratch_shapes=scratch,
            compiler_params=cparams,
        )(xb, wb, b2)

    if (Mp, Np) != (M, N):
        out = out[:M, :N]
    return out


# ---------------------------- attention kernel ------------------------------ #

def _attention_kernel(q_ref, kv_ref, o_ref, *, n_heads, d_head, d_attn, scale):
    # One batch element per grid step; all heads handled here.  Inputs/outputs
    # stay in the lane-dense (Sx, H*Dh) / (Sc, 2*H*Dh) layout; per-head column
    # slices are static.  For real SD sizes add an Sx-tile grid axis.
    # TODO(synk): for very long Sc, switch to an online-softmax (flash) loop.
    for h in range(n_heads):
        lo = h * d_head
        qh = q_ref[0, :, lo:lo + d_head]                       # (Sx, Dh) bf16
        kh = kv_ref[0, :, lo:lo + d_head]                      # (Sc, Dh) bf16
        vh = kv_ref[0, :, d_attn + lo:d_attn + lo + d_head]    # (Sc, Dh) bf16
        # q @ k^T via dot_general (no materialized transpose), f32 accumulate.
        s = jax.lax.dot_general(qh, kh, (((1,), (1,)), ((), ())),
                                preferred_element_type=jnp.float32) * scale
        m = jnp.max(s, axis=-1, keepdims=True)
        p = jnp.exp(s - m)
        l = jnp.sum(p, axis=-1, keepdims=True)
        o = jnp.dot(p.astype(qh.dtype), vh,
                    preferred_element_type=jnp.float32)        # (Sx, Dh)
        o = o * pl.reciprocal(l, approx=True)                  # fold 1/l (EUP)
        o_ref[0, :, lo:lo + d_head] = o.astype(o_ref.dtype)


# ------------------------------ forward pass -------------------------------- #

def cross_attention_forward(prepared, x, cond, *, n_heads, d_head):
    B, Sx, d_model = x.shape
    _, Sc, d_cond = cond.shape
    d_attn = n_heads * d_head
    scale = float(d_head) ** -0.5

    # Projections. K and V are fused into a single matmul over cond.
    q = pallas_linear(x.reshape(B * Sx, d_model), prepared["wq_t"],
                      out_dtype=jnp.bfloat16)                  # (B*Sx, d_attn)
    kv = pallas_linear(cond.reshape(B * Sc, d_cond), prepared["wkv_t"],
                       out_dtype=jnp.bfloat16)                 # (B*Sc, 2*d_attn)

    q3 = q.reshape(B, Sx, d_attn)
    kv3 = kv.reshape(B, Sc, 2 * d_attn)

    out = pl.pallas_call(
        partial(_attention_kernel, n_heads=n_heads, d_head=d_head,
                d_attn=d_attn, scale=scale),
        out_shape=jax.ShapeDtypeStruct((B, Sx, d_attn), jnp.bfloat16),
        grid=(B,),
        in_specs=[pl.BlockSpec((1, Sx, d_attn), lambda b: (b, 0, 0)),
                  pl.BlockSpec((1, Sc, 2 * d_attn), lambda b: (b, 0, 0))],
        out_specs=pl.BlockSpec((1, Sx, d_attn), lambda b: (b, 0, 0)),
        compiler_params=pltpu.CompilerParams(
            dimension_semantics=("parallel",)),
    )(q3, kv3)

    # to_out Linear (with bias), f32 result.
    y = pallas_linear(out.reshape(B * Sx, d_attn), prepared["wo_t"],
                      prepared["bo"], out_dtype=jnp.float32)
    return y.reshape(B, Sx, d_model)


# ------------------------ deterministic parameter init ---------------------- #

def init_params(key, d_model, d_cond, d_head, n_heads):
    d_attn = d_head * n_heads
    ks = jax.random.split(key, 5)

    def uniform(k, shape, fan_in):
        bound = 1.0 / (fan_in ** 0.5)
        return jax.random.uniform(k, shape, jnp.float32, -bound, bound)

    return {
        "wq": uniform(ks[0], (d_attn, d_model), d_model),   # to_q.weight
        "wk": uniform(ks[1], (d_attn, d_cond), d_cond),     # to_k.weight
        "wv": uniform(ks[2], (d_attn, d_cond), d_cond),     # to_v.weight
        "wo": uniform(ks[3], (d_model, d_attn), d_attn),    # to_out[0].weight
        "bo": uniform(ks[4], (d_model,), d_attn),           # to_out[0].bias
    }


def prepare_params(params):
    """One-time weight prep: transpose to (Din, Dout), fuse K/V, cast to bf16."""
    return {
        "wq_t": params["wq"].T.astype(jnp.bfloat16),
        "wkv_t": jnp.concatenate([params["wk"].T, params["wv"].T],
                                 axis=1).astype(jnp.bfloat16),
        "wo_t": params["wo"].T.astype(jnp.bfloat16),
        "bo": params["bo"].astype(jnp.float32),
    }


# --------------------------- pure-JAX reference ----------------------------- #

def reference_forward(params, x, cond, *, n_heads, d_head):
    B, Sx, d_model = x.shape
    _, Sc, _ = cond.shape
    scale = float(d_head) ** -0.5
    q = (x @ params["wq"].T).reshape(B, Sx, n_heads, d_head)
    k = (cond @ params["wk"].T).reshape(B, Sc, n_heads, d_head)
    v = (cond @ params["wv"].T).reshape(B, Sc, n_heads, d_head)
    attn = jnp.einsum("bihd,bjhd->bhij", q, k) * scale
    attn = jax.nn.softmax(attn, axis=-1)
    out = jnp.einsum("bhij,bjhd->bihd", attn, v).reshape(B, Sx, n_heads * d_head)
    return out @ params["wo"].T + params["bo"]


# ---------------------------------- main ------------------------------------ #

if __name__ == "__main__":
    B, Sx, Sc = 2, 16, 8
    d_model, d_cond = 32, 24
    n_heads, d_head = 2, 16

    key = jax.random.PRNGKey(0)
    kx, kc, kp = jax.random.split(key, 3)
    x = jax.random.normal(kx, (B, Sx, d_model), jnp.float32)
    cond = jax.random.normal(kc, (B, Sc, d_cond), jnp.float32)
    params = init_params(kp, d_model, d_cond, d_head, n_heads)
    prepared = prepare_params(params)

    fwd = jax.jit(partial(cross_attention_forward, n_heads=n_heads, d_head=d_head))
    y = jax.block_until_ready(fwd(prepared, x, cond))

    y_ref = reference_forward(params, x, cond, n_heads=n_heads, d_head=d_head)
    assert y.shape == (B, Sx, d_model)
    max_err = float(jnp.max(jnp.abs(y - y_ref)))
    assert jnp.allclose(y, y_ref, atol=2e-2, rtol=2e-2), \
        f"mismatch vs reference, max abs err = {max_err}"

    print("KERNEL_OK")
</pallas_src>

<mosaic_0001>
module attributes {stable_mosaic.version = 11 : i64} {
  func.func @_matmul_kernel(%arg0: i32, %arg1: i32, %arg2: i32, %arg3: memref<32x128xbf16, #tpu.memory_space<vmem>>, %arg4: memref<128x128xbf16, #tpu.memory_space<vmem>>, %arg5: memref<32x128xbf16, #tpu.memory_space<vmem>>, %arg6: memref<32x128xf32, #tpu.memory_space<vmem>>) attributes {dimension_semantics = [#tpu.dimension_semantics<parallel>, #tpu.dimension_semantics<parallel>, #tpu.dimension_semantics<arbitrary>], iteration_bounds = array<i64: 1, 1, 1>, scalar_prefetch = 0 : i64, scratch_operands = 1 : i64, tpu.core_type = #tpu.core_type<tc>, window_params = [{transform_indices = @transform_0, window_bounds = array<i64: 32, 128>}, {transform_indices = @transform_1, window_bounds = array<i64: 128, 128>}, {transform_indices = @transform_2, window_bounds = array<i64: 32, 128>}]} {
    %c0_i32 = arith.constant 0 : i32
    %0 = arith.cmpi eq, %arg2, %c0_i32 : i32
    %1 = arith.extui %0 : i1 to i32
    %c0_i32_0 = arith.constant 0 : i32
    %2 = arith.cmpi ne, %1, %c0_i32_0 : i32
    scf.if %2 {
      %cst_10 = arith.constant 0.000000e+00 : f32
      %12 = vector.broadcast %cst_10 : f32 to vector<32x128xf32>
      %c0_11 = arith.constant 0 : index
      %c0_12 = arith.constant 0 : index
      %13 = vector.load %arg6[%c0_11, %c0_12] : memref<32x128xf32, #tpu.memory_space<vmem>>, vector<32x128xf32>
      tpu.vector_store %arg6[%c0_11, %c0_12], %12 {strides = array<i32>} : memref<32x128xf32, #tpu.memory_space<vmem>>, vector<32x128xf32>,
    } else {
    }
    %c0 = arith.constant 0 : index
    %c0_1 = arith.constant 0 : index
    %3 = vector.load %arg6[%c0, %c0_1] : memref<32x128xf32, #tpu.memory_space<vmem>>, vector<32x128xf32>
    %c0_2 = arith.constant 0 : index
    %c0_3 = arith.constant 0 : index
    %4 = vector.load %arg3[%c0_2, %c0_3] : memref<32x128xbf16, #tpu.memory_space<vmem>>, vector<32x128xbf16>
    %c0_4 = arith.constant 0 : index
    %c0_5 = arith.constant 0 : index
    %5 = vector.load %arg4[%c0_4, %c0_5] : memref<128x128xbf16, #tpu.memory_space<vmem>>, vector<128x128xbf16>
    %cst = arith.constant dense<0.000000e+00> : vector<32x128xf32>
    %6 = tpu.matmul %4, %5, %cst {dimension_numbers = #tpu.dot_dimension_numbers<[1], [0], [0], [1], [0, 0, 1, 1], [], []>} : vector<32x128xbf16>, vector<128x128xbf16>, vector<32x128xf32> -> vector<32x128xf32>
    %7 = arith.addf %3, %6 : vector<32x128xf32>
    %c0_6 = arith.constant 0 : index
    %c0_7 = arith.constant 0 : index
    %8 = vector.load %arg6[%c0_6, %c0_7] : memref<32x128xf32, #tpu.memory_space<vmem>>, vector<32x128xf32>
    tpu.vector_store %arg6[%c0_6, %c0_7], %7 {strides = array<i32>} : memref<32x128xf32, #tpu.memory_space<vmem>>, vector<32x128xf32>,
    %c0_i32_8 = arith.constant 0 : i32
    %9 = arith.cmpi eq, %arg2, %c0_i32_8 : i32
    %10 = arith.extui %9 : i1 to i32
    %c0_i32_9 = arith.constant 0 : i32
    %11 = arith.cmpi ne, %10, %c0_i32_9 : i32
    scf.if %11 {
      %c0_10 = arith.constant 0 : index
      %c0_11 = arith.constant 0 : index
      %12 = vector.load %arg6[%c0_10, %c0_11] : memref<32x128xf32, #tpu.memory_space<vmem>>, vector<32x128xf32>
      %13 = arith.truncf %12 : vector<32x128xf32> to vector<32x128xbf16>
      %c0_12 = arith.constant 0 : index
      %c0_13 = arith.constant 0 : index
      %14 = vector.load %arg5[%c0_12, %c0_13] : memref<32x128xbf16, #tpu.memory_space<vmem>>, vector<32x128xbf16>
      tpu.vector_store %arg5[%c0_12, %c0_13], %13 {strides = array<i32>} : memref<32x128xbf16, #tpu.memory_space<vmem>>, vector<32x128xbf16>,
    } else {
    }
    return
  }
  func.func @transform_0(%arg0: i32, %arg1: i32, %arg2: i32) -> (i32, i32) {
    %c0_i32 = arith.constant 0 : i32
    return %arg0, %arg2 : i32, i32
  }
  func.func @transform_1(%arg0: i32, %arg1: i32, %arg2: i32) -> (i32, i32) {
    %c0_i32 = arith.constant 0 : i32
    return %arg2, %arg1 : i32, i32
  }
  func.func @transform_2(%arg0: i32, %arg1: i32, %arg2: i32) -> (i32, i32) {
    %c0_i32 = arith.constant 0 : i32
    return %arg0, %arg1 : i32, i32
  }
}

module attributes {stable_mosaic.version = 11 : i64} {
  func.func @_matmul_kernel(%arg0: i32, %arg1: i32, %arg2: i32, %arg3: memref<16x128xbf16, #tpu.memory_space<vmem>>, %arg4: memref<128x128xbf16, #tpu.memory_space<vmem>>, %arg5: memref<16x128xbf16, #tpu.memory_space<vmem>>, %arg6: memref<16x128xf32, #tpu.memory_space<vmem>>) attributes {dimension_semantics = [#tpu.dimension_semantics<parallel>, #tpu.dimension_semantics<parallel>, #tpu.dimension_semantics<arbitrary>], iteration_bounds = array<i64: 1, 1, 1>, scalar_prefetch = 0 : i64, scratch_operands = 1 : i64, tpu.core_type = #tpu.core_type<tc>, window_params = [{transform_indices = @transform_0, window_bounds = array<i64: 16, 128>}, {transform_indices = @transform_1, window_bounds = array<i64: 128, 128>}, {transform_indices = @transform_2, window_bounds = array<i64: 16, 128>}]} {
    %c0_i32 = arith.constant 0 : i32
    %0 = arith.cmpi eq, %arg2, %c0_i32 : i32
    %1 = arith.extui %0 : i1 to i32
    %c0_i32_0 = arith.constant 0 : i32
    %2 = arith.cmpi ne, %1, %c0_i32_0 : i32
    scf.if %2 {
      %cst_10 = arith.constant 0.000000e+00 : f32
      %12 = vector.broadcast %cst_10 : f32 to vector<16x128xf32>
      %c0_11 = arith.constant 0 : index
      %c0_12 = arith.constant 0 : index
      %13 = vector.load %arg6[%c0_11, %c0_12] : memref<16x128xf32, #tpu.memory_space<vmem>>, vector<16x128xf32>
      tpu.vector_store %arg6[%c0_11, %c0_12], %12 {strides = array<i32>} : memref<16x128xf32, #tpu.memory_space<vmem>>, vector<16x128xf32>,
    } else {
    }
    %c0 = arith.constant 0 : index
    %c0_1 = arith.constant 0 : index
    %3 = vector.load %arg6[%c0, %c0_1] : memref<16x128xf32, #tpu.memory_space<vmem>>, vector<16x128xf32>
    %c0_2 = arith.constant 0 : index
    %c0_3 = arith.constant 0 : index
    %4 = vector.load %arg3[%c0_2, %c0_3] : memref<16x128xbf16, #tpu.memory_space<vmem>>, vector<16x128xbf16>
    %c0_4 = arith.constant 0 : index
    %c0_5 = arith.constant 0 : index
    %5 = vector.load %arg4[%c0_4, %c0_5] : memref<128x128xbf16, #tpu.memory_space<vmem>>, vector<128x128xbf16>
    %cst = arith.constant dense<0.000000e+00> : vector<16x128xf32>
    %6 = tpu.matmul %4, %5, %cst {dimension_numbers = #tpu.dot_dimension_numbers<[1], [0], [0], [1], [0, 0, 1, 1], [], []>} : vector<16x128xbf16>, vector<128x128xbf16>, vector<16x128xf32> -> vector<16x128xf32>
    %7 = arith.addf %3, %6 : vector<16x128xf32>
    %c0_6 = arith.constant 0 : index
    %c0_7 = arith.constant 0 : index
    %8 = vector.load %arg6[%c0_6, %c0_7] : memref<16x128xf32, #tpu.memory_space<vmem>>, vector<16x128xf32>
    tpu.vector_store %arg6[%c0_6, %c0_7], %7 {strides = array<i32>} : memref<16x128xf32, #tpu.memory_space<vmem>>, vector<16x128xf32>,
    %c0_i32_8 = arith.constant 0 : i32
    %9 = arith.cmpi eq, %arg2, %c0_i32_8 : i32
    %10 = arith.extui %9 : i1 to i32
    %c0_i32_9 = arith.constant 0 : i32
    %11 = arith.cmpi ne, %10, %c0_i32_9 : i32
    scf.if %11 {
      %c0_10 = arith.constant 0 : index
      %c0_11 = arith.constant 0 : index
      %12 = vector.load %arg6[%c0_10, %c0_11] : memref<16x128xf32, #tpu.memory_space<vmem>>, vector<16x128xf32>
      %13 = arith.truncf %12 : vector<16x128xf32> to vector<16x128xbf16>
      %c0_12 = arith.constant 0 : index
      %c0_13 = arith.constant 0 : index
      %14 = vector.load %arg5[%c0_12, %c0_13] : memref<16x128xbf16, #tpu.memory_space<vmem>>, vector<16x128xbf16>
      tpu.vector_store %arg5[%c0_12, %c0_13], %13 {strides = array<i32>} : memref<16x128xbf16, #tpu.memory_space<vmem>>, vector<16x128xbf16>,
    } else {
    }
    return
  }
  func.func @transform_0(%arg0: i32, %arg1: i32, %arg2: i32) -> (i32, i32) {
    %c0_i32 = arith.constant 0 : i32
    return %arg0, %arg2 : i32, i32
  }
  func.func @transform_1(%arg0: i32, %arg1: i32, %arg2: i32) -> (i32, i32) {
    %c0_i32 = arith.constant 0 : i32
    return %arg2, %arg1 : i32, i32
  }
  func.func @transform_2(%arg0: i32, %arg1: i32, %arg2: i32) -> (i32, i32) {
    %c0_i32 = arith.constant 0 : i32
    return %arg0, %arg1 : i32, i32
  }
}

module attributes {stable_mosaic.version = 11 : i64} {
  func.func @_attention_kernel(%arg0: i32, %arg1: memref<1x16x32xbf16, #tpu.memory_space<vmem>>, %arg2: memref<1x8x64xbf16, #tpu.memory_space<vmem>>, %arg3: memref<1x16x32xbf16, #tpu.memory_space<vmem>>) attributes {dimension_semantics = [#tpu.dimension_semantics<parallel>], iteration_bounds = array<i64: 2>, scalar_prefetch = 0 : i64, scratch_operands = 0 : i64, tpu.core_type = #tpu.core_type<tc>, window_params = [{transform_indices = @transform_0, window_bounds = array<i64: 1, 16, 32>}, {transform_indices = @transform_1, window_bounds = array<i64: 1, 8, 64>}, {transform_indices = @transform_2, window_bounds = array<i64: 1, 16, 32>}]} {
    %c0 = arith.constant 0 : index
    %c0_0 = arith.constant 0 : index
    %c0_1 = arith.constant 0 : index
    %0 = vector.load %arg1[%c0, %c0_0, %c0_1] : memref<1x16x32xbf16, #tpu.memory_space<vmem>>, vector<1x16x16xbf16>
    %1 = vector.shape_cast %0 : vector<1x16x16xbf16> to vector<16x16xbf16>
    %c0_2 = arith.constant 0 : index
    %c0_3 = arith.constant 0 : index
    %c0_4 = arith.constant 0 : index
    %2 = vector.load %arg2[%c0_2, %c0_3, %c0_4] : memref<1x8x64xbf16, #tpu.memory_space<vmem>>, vector<1x8x16xbf16>
    %3 = vector.shape_cast %2 : vector<1x8x16xbf16> to vector<8x16xbf16>
    %c0_5 = arith.constant 0 : index
    %c0_6 = arith.constant 0 : index
    %c32 = arith.constant 32 : index
    %4 = vector.load %arg2[%c0_5, %c0_6, %c32] : memref<1x8x64xbf16, #tpu.memory_space<vmem>>, vector<1x8x16xbf16>
    %5 = vector.shape_cast %4 : vector<1x8x16xbf16> to vector<8x16xbf16>
    %cst = arith.constant dense<0.000000e+00> : vector<16x8xf32>
    %6 = tpu.matmul %1, %3, %cst {dimension_numbers = #tpu.dot_dimension_numbers<[1], [1], [0], [0], [0, 0, 1, 0], [], []>} : vector<16x16xbf16>, vector<8x16xbf16>, vector<16x8xf32> -> vector<16x8xf32>
    %cst_7 = arith.constant 2.500000e-01 : f32
    %7 = vector.broadcast %cst_7 : f32 to vector<16x8xf32>
    %8 = arith.mulf %6, %7 : vector<16x8xf32>
    %cst_8 = arith.constant dense<0xFF800000> : vector<16xf32>
    %9 = vector.multi_reduction <maximumf>, %8, %cst_8 [1] : vector<16x8xf32> to vector<16xf32>
    %10 = vector.shape_cast %9 : vector<16xf32> to vector<16x1xf32>
    %11 = vector.broadcast %10 : vector<16x1xf32> to vector<16x8xf32>
    %12 = arith.subf %8, %11 : vector<16x8xf32>
    %13 = math.exp %12 : vector<16x8xf32>
    %cst_9 = arith.constant dense<0.000000e+00> : vector<16xf32>
    %14 = vector.multi_reduction <add>, %13, %cst_9 [1] : vector<16x8xf32> to vector<16xf32>
    %15 = vector.shape_cast %14 : vector<16xf32> to vector<16x1xf32>
    %16 = arith.truncf %13 : vector<16x8xf32> to vector<16x8xbf16>
    %cst_10 = arith.constant dense<0.000000e+00> : vector<16x16xf32>
    %17 = tpu.matmul %16, %5, %cst_10 {dimension_numbers = #tpu.dot_dimension_numbers<[1], [0], [0], [1], [0, 0, 1, 1], [], []>} : vector<16x8xbf16>, vector<8x16xbf16>, vector<16x16xf32> -> vector<16x16xf32>
    %18 = tpu.reciprocal %15 {approx = true} : vector<16x1xf32> -> vector<16x1xf32>
    %19 = vector.broadcast %18 : vector<16x1xf32> to vector<16x16xf32>
    %20 = arith.mulf %17, %19 : vector<16x16xf32>
    %21 = arith.truncf %20 : vector<16x16xf32> to vector<16x16xbf16>
    %c0_11 = arith.constant 0 : index
    %c0_12 = arith.constant 0 : index
    %c0_13 = arith.constant 0 : index
    %22 = vector.load %arg3[%c0_11, %c0_12, %c0_13] : memref<1x16x32xbf16, #tpu.memory_space<vmem>>, vector<1x16x16xbf16>
    %23 = vector.shape_cast %22 : vector<1x16x16xbf16> to vector<16x16xbf16>
    %24 = vector.shape_cast %21 : vector<16x16xbf16> to vector<1x16x16xbf16>
    tpu.vector_store %arg3[%c0_11, %c0_12, %c0_13], %24 {strides = array<i32>} : memref<1x16x32xbf16, #tpu.memory_space<vmem>>, vector<1x16x16xbf16>,
    %c0_14 = arith.constant 0 : index
    %c0_15 = arith.constant 0 : index
    %c16 = arith.constant 16 : index
    %25 = vector.load %arg1[%c0_14, %c0_15, %c16] : memref<1x16x32xbf16, #tpu.memory_space<vmem>>, vector<1x16x16xbf16>
    %26 = vector.shape_cast %25 : vector<1x16x16xbf16> to vector<16x16xbf16>
    %c0_16 = arith.constant 0 : index
    %c0_17 = arith.constant 0 : index
    %c16_18 = arith.constant 16 : index
    %27 = vector.load %arg2[%c0_16, %c0_17, %c16_18] : memref<1x8x64xbf16, #tpu.memory_space<vmem>>, vector<1x8x16xbf16>
    %28 = vector.shape_cast %27 : vector<1x8x16xbf16> to vector<8x16xbf16>
    %c0_19 = arith.constant 0 : index
    %c0_20 = arith.constant 0 : index
    %c48 = arith.constant 48 : index
    %29 = vector.load %arg2[%c0_19, %c0_20, %c48] : memref<1x8x64xbf16, #tpu.memory_space<vmem>>, vector<1x8x16xbf16>
    %30 = vector.shape_cast %29 : vector<1x8x16xbf16> to vector<8x16xbf16>
    %cst_21 = arith.constant dense<0.000000e+00> : vector<16x8xf32>
    %31 = tpu.matmul %26, %28, %cst_21 {dimension_numbers = #tpu.dot_dimension_numbers<[1], [1], [0], [0], [0, 0, 1, 0], [], []>} : vector<16x16xbf16>, vector<8x16xbf16>, vector<16x8xf32> -> vector<16x8xf32>
    %cst_22 = arith.constant 2.500000e-01 : f32
    %32 = vector.broadcast %cst_22 : f32 to vector<16x8xf32>
    %33 = arith.mulf %31, %32 : vector<16x8xf32>
    %cst_23 = arith.constant dense<0xFF800000> : vector<16xf32>
    %34 = vector.multi_reduction <maximumf>, %33, %cst_23 [1] : vector<16x8xf32> to vector<16xf32>
    %35 = vector.shape_cast %34 : vector<16xf32> to vector<16x1xf32>
    %36 = vector.broadcast %35 : vector<16x1xf32> to vector<16x8xf32>
    %37 = arith.subf %33, %36 : vector<16x8xf32>
    %38 = math.exp %37 : vector<16x8xf32>
    %cst_24 = arith.constant dense<0.000000e+00> : vector<16xf32>
    %39 = vector.multi_reduction <add>, %38, %cst_24 [1] : vector<16x8xf32> to vector<16xf32>
    %40 = vector.shape_cast %39 : vector<16xf32> to vector<16x1xf32>
    %41 = arith.truncf %38 : vector<16x8xf32> to vector<16x8xbf16>
    %cst_25 = arith.constant dense<0.000000e+00> : vector<16x16xf32>
    %42 = tpu.matmul %41, %30, %cst_25 {dimension_numbers = #tpu.dot_dimension_numbers<[1], [0], [0], [1], [0, 0, 1, 1], [], []>} : vector<16x8xbf16>, vector<8x16xbf16>, vector<16x16xf32> -> vector<16x16xf32>
    %43 = tpu.reciprocal %40 {approx = true} : vector<16x1xf32> -> vector<16x1xf32>
    %44 = vector.broadcast %43 : vector<16x1xf32> to vector<16x16xf32>
    %45 = arith.mulf %42, %44 : vector<16x16xf32>
    %46 = arith.truncf %45 : vector<16x16xf32> to vector<16x16xbf16>
    %c0_26 = arith.constant 0 : index
    %c0_27 = arith.constant 0 : index
    %c16_28 = arith.constant 16 : index
    %47 = vector.load %arg3[%c0_26, %c0_27, %c16_28] : memref<1x16x32xbf16, #tpu.memory_space<vmem>>, vector<1x16x16xbf16>
    %48 = vector.shape_cast %47 : vector<1x16x16xbf16> to vector<16x16xbf16>
    %49 = vector.shape_cast %46 : vector<16x16xbf16> to vector<1x16x16xbf16>
    tpu.vector_store %arg3[%c0_26, %c0_27, %c16_28], %49 {strides = array<i32>} : memref<1x16x32xbf16, #tpu.memory_space<vmem>>, vector<1x16x16xbf16>,
    return
  }
  func.func @transform_0(%arg0: i32) -> (i32, i32, i32) {
    %c0_i32 = arith.constant 0 : i32
    %c0_i32_0 = arith.constant 0 : i32
    %c0_i32_1 = arith.constant 0 : i32
    return %arg0, %c0_i32, %c0_i32_0 : i32, i32, i32
  }
  func.func @transform_1(%arg0: i32) -> (i32, i32, i32) {
    %c0_i32 = arith.constant 0 : i32
    %c0_i32_0 = arith.constant 0 : i32
    %c0_i32_1 = arith.constant 0 : i32
    return %arg0, %c0_i32, %c0_i32_0 : i32, i32, i32
  }
  func.func @transform_2(%arg0: i32) -> (i32, i32, i32) {
    %c0_i32 = arith.constant 0 : i32
    %c0_i32_0 = arith.constant 0 : i32
    %c0_i32_1 = arith.constant 0 : i32
    return %arg0, %c0_i32, %c0_i32_0 : i32, i32, i32
  }
}

module attributes {stable_mosaic.version = 11 : i64} {
  func.func @_matmul_bias_kernel(%arg0: i32, %arg1: i32, %arg2: i32, %arg3: memref<32x128xbf16, #tpu.memory_space<vmem>>, %arg4: memref<128x128xbf16, #tpu.memory_space<vmem>>, %arg5: memref<1x128xf32, #tpu.memory_space<vmem>>, %arg6: memref<32x128xf32, #tpu.memory_space<vmem>>, %arg7: memref<32x128xf32, #tpu.memory_space<vmem>>) attributes {dimension_semantics = [#tpu.dimension_semantics<parallel>, #tpu.dimension_semantics<parallel>, #tpu.dimension_semantics<arbitrary>], iteration_bounds = array<i64: 1, 1, 1>, scalar_prefetch = 0 : i64, scratch_operands = 1 : i64, tpu.core_type = #tpu.core_type<tc>, window_params = [{transform_indices = @transform_0, window_bounds = array<i64: 32, 128>}, {transform_indices = @transform_1, window_bounds = array<i64: 128, 128>}, {transform_indices = @transform_2, window_bounds = array<i64: 1, 128>}, {transform_indices = @transform_3, window_bounds = array<i64: 32, 128>}]} {
    %c0_i32 = arith.constant 0 : i32
    %0 = arith.cmpi eq, %arg2, %c0_i32 : i32
    %1 = arith.extui %0 : i1 to i32
    %c0_i32_0 = arith.constant 0 : i32
    %2 = arith.cmpi ne, %1, %c0_i32_0 : i32
    scf.if %2 {
      %cst_10 = arith.constant 0.000000e+00 : f32
      %12 = vector.broadcast %cst_10 : f32 to vector<32x128xf32>
      %c0_11 = arith.constant 0 : index
      %c0_12 = arith.constant 0 : index
      %13 = vector.load %arg7[%c0_11, %c0_12] : memref<32x128xf32, #tpu.memory_space<vmem>>, vector<32x128xf32>
      tpu.vector_store %arg7[%c0_11, %c0_12], %12 {strides = array<i32>} : memref<32x128xf32, #tpu.memory_space<vmem>>, vector<32x128xf32>,
    } else {
    }
    %c0 = arith.constant 0 : index
    %c0_1 = arith.constant 0 : index
    %3 = vector.load %arg7[%c0, %c0_1] : memref<32x128xf32, #tpu.memory_space<vmem>>, vector<32x128xf32>
    %c0_2 = arith.constant 0 : index
    %c0_3 = arith.constant 0 : index
    %4 = vector.load %arg3[%c0_2, %c0_3] : memref<32x128xbf16, #tpu.memory_space<vmem>>, vector<32x128xbf16>
    %c0_4 = arith.constant 0 : index
    %c0_5 = arith.constant 0 : index
    %5 = vector.load %arg4[%c0_4, %c0_5] : memref<128x128xbf16, #tpu.memory_space<vmem>>, vector<128x128xbf16>
    %cst = arith.constant dense<0.000000e+00> : vector<32x128xf32>
    %6 = tpu.matmul %4, %5, %cst {dimension_numbers = #tpu.dot_dimension_numbers<[1], [0], [0], [1], [0, 0, 1, 1], [], []>} : vector<32x128xbf16>, vector<128x128xbf16>, vector<32x128xf32> -> vector<32x128xf32>
    %7 = arith.addf %3, %6 : vector<32x128xf32>
    %c0_6 = arith.constant 0 : index
    %c0_7 = arith.constant 0 : index
    %8 = vector.load %arg7[%c0_6, %c0_7] : memref<32x128xf32, #tpu.memory_space<vmem>>, vector<32x128xf32>
    tpu.vector_store %arg7[%c0_6, %c0_7], %7 {strides = array<i32>} : memref<32x128xf32, #tpu.memory_space<vmem>>, vector<32x128xf32>,
    %c0_i32_8 = arith.constant 0 : i32
    %9 = arith.cmpi eq, %arg2, %c0_i32_8 : i32
    %10 = arith.extui %9 : i1 to i32
    %c0_i32_9 = arith.constant 0 : i32
    %11 = arith.cmpi ne, %10, %c0_i32_9 : i32
    scf.if %11 {
      %c0_10 = arith.constant 0 : index
      %c0_11 = arith.constant 0 : index
      %12 = vector.load %arg7[%c0_10, %c0_11] : memref<32x128xf32, #tpu.memory_space<vmem>>, vector<32x128xf32>
      %c0_12 = arith.constant 0 : index
      %c0_13 = arith.constant 0 : index
      %13 = vector.load %arg5[%c0_12, %c0_13] : memref<1x128xf32, #tpu.memory_space<vmem>>, vector<1x128xf32>
      %14 = vector.broadcast %13 : vector<1x128xf32> to vector<32x128xf32>
      %15 = arith.addf %12, %14 : vector<32x128xf32>
      %c0_14 = arith.constant 0 : index
      %c0_15 = arith.constant 0 : index
      %16 = vector.load %arg6[%c0_14, %c0_15] : memref<32x128xf32, #tpu.memory_space<vmem>>, vector<32x128xf32>
      tpu.vector_store %arg6[%c0_14, %c0_15], %15 {strides = array<i32>} : memref<32x128xf32, #tpu.memory_space<vmem>>, vector<32x128xf32>,
    } else {
    }
    return
  }
  func.func @transform_0(%arg0: i32, %arg1: i32, %arg2: i32) -> (i32, i32) {
    %c0_i32 = arith.constant 0 : i32
    return %arg0, %arg2 : i32, i32
  }
  func.func @transform_1(%arg0: i32, %arg1: i32, %arg2: i32) -> (i32, i32) {
    %c0_i32 = arith.constant 0 : i32
    return %arg2, %arg1 : i32, i32
  }
  func.func @transform_2(%arg0: i32, %arg1: i32, %arg2: i32) -> (i32, i32) {
    %c0_i32 = arith.constant 0 : i32
    %c0_i32_0 = arith.constant 0 : i32
    return %c0_i32, %arg1 : i32, i32
  }
  func.func @transform_3(%arg0: i32, %arg1: i32, %arg2: i32) -> (i32, i32) {
    %c0_i32 = arith.constant 0 : i32
    return %arg0, %arg1 : i32, i32
  }
}

</mosaic_0001>

<bundles_post_ra>
// kernel: cross_attention_forward.4
= control target key start
LH: loop header
LB: loop body
LE: loop exit
PB: predicated region body
PF: predicated region fallthrough
CT: control target
= control target key end

     0   :  { %s312_s1 = inlined_call_operand.vmem [shape: bf16[128,128], index: 1, kind: input, shape index: {}]   ;;  %s313_s0 = inlined_call_operand.vmem [shape: bf16[32,128], index: 0, kind: input, shape index: {}]   ;;  %s314_s2 = inlined_call_operand.vmem [shape: bf16[32,128], index: 2, kind: output, shape index: {}]  }
   0x1   :  { %v251_v0 = vld [vmem:[%s312_s1] sm:$0xff]   ;;  %v252_v1 = vld [vmem:[%s312_s1 + $0x8] sm:$0xff]   ;;  %v253_v2 = vld [vmem:[%s312_s1 + $0x10] sm:$0xff]  }
   0x2   :  { %231 = vmatprep.subr.bf16.mxu0 %v251_v0  ;;  %v254_v3 = vld [vmem:[%s312_s1 + $0x18] sm:$0xff]   ;;  %v259_v4 = vld [vmem:[%s313_s0] sm:$0xff]   ;;  %v256_v6 = vld [vmem:[%s312_s1 + $0x28] sm:$0xff]  }
   0x3   :  { %232 = vmatpush3.bf16.msra.mxu0 %v251_v0  ;;  %247 = vmatprep.mubr.bf16.mxu0 %v259_v4  ;;  %v255_v5 = vld [vmem:[%s312_s1 + $0x20] sm:$0xff]   ;;  %v257_v7 = vld [vmem:[%s312_s1 + $0x30] sm:$0xff]   ;;  %v258_v8 = vld [vmem:[%s312_s1 + $0x38] sm:$0xff]  }
   0x4   :  { %233 = vmatprep.subr.bf16.mxu0 %v252_v1  ;;  %v260_v9 = vld [vmem:[%s313_s0 + $0x8] sm:$0xff]  }
   0x7   :  { %234 = vmatpush3.bf16.msra.mxu0 %v252_v1 }
   0x8   :  { %235 = vmatprep.subr.bf16.mxu0 %v253_v2 }
   0xb   :  { %236 = vmatpush3.bf16.msra.mxu0 %v253_v2 }
   0xc   :  { %237 = vmatprep.subr.bf16.mxu0 %v254_v3 }
   0xf   :  { %238 = vmatpush3.bf16.msra.mxu0 %v254_v3 }
  0x10   :  { %239 = vmatprep.subr.bf16.mxu0 %v255_v5 }
  0x13   :  { %240 = vmatpush3.bf16.msra.mxu0 %v255_v5 }
  0x14   :  { %241 = vmatprep.subr.bf16.mxu0 %v256_v6 }
  0x17   :  { %242 = vmatpush3.bf16.msra.mxu0 %v256_v6 }
  0x18   :  { %243 = vmatprep.subr.bf16.mxu0 %v257_v7 }
  0x1b   :  { %244 = vmatpush3.bf16.msra.mxu0 %v257_v7 }
  0x1c   :  { %245 = vmatprep.subr.bf16.mxu0 %v258_v8 }
  0x1f   :  { %246 = vmatpush3.bf16.msra.mxu0 %v258_v8 }
  0x22   :  { %248 = vmatmul.mubr.bf16.vlgmr.msra.gmra.mrb[0].mxu0 %v260_v9 }
  0xf5   :  { %v249_v10 = vpop.f32.mrb[0].mxu0 }
  0xf6   :  { %v138_v11 = vpop.f32.mrb[1].mxu0 }
  0xf7   :  { %v250_v12 = vpop.f32.mrb[2].mxu0 }
  0xf8   :  { %v218_v13 = vpack.c.bf16 %v250_v12, %v249_v10  ;;  %v141_v14 = vpop.f32.mrb[3].mxu0 }
  0xf9   :  { %v213_v15 = vpack.c.bf16 %v141_v14, %v138_v11 }
  0xfa   :  { %220 = vst [vmem:[%s314_s2 + $0x8] sm:$0xff] %v218_v13  }
  0xfb   :  { %214 = vst [vmem:[%s314_s2] sm:$0xff] %v213_v15  }

// kernel: cross_attention_forward.5
= control target key start
LH: loop header
LB: loop body
LE: loop exit
PB: predicated region body
PF: predicated region fallthrough
CT: control target
= control target key end

     0   :  { %v214_v0 = vmov 0.0   ;;  %vm215_vm0 = vmmov 0   ;;  %s261_s1 = inlined_call_operand.vmem [shape: bf16[128,128], index: 1, kind: input, shape index: {}]   ;;  %s262_s0 = inlined_call_operand.vmem [shape: bf16[16,128], index: 0, kind: input, shape index: {}]   ;;  %s263_s2 = inlined_call_operand.vmem [shape: bf16[16,128], index: 2, kind: output, shape index: {}]  }
   0x1   :  { %183 = vmatprep.subr.bf16.mxu0 %v214_v0  ;;  %v205_v1 = vld [vmem:[%s261_s1] sm:$0xff]   ;;  %199 = vmatprep.mubr.msk.bf16.mxu0 %vm215_vm0, %v214_v0  ;;  %v206_v2 = vld [vmem:[%s261_s1 + $0x8] sm:$0xff]   ;;  %v207_v3 = vld [vmem:[%s261_s1 + $0x10] sm:$0xff]  }
   0x2   :  { %184 = vmatpush3.bf16.msra.mxu0 %v205_v1  ;;  %v208_v4 = vld [vmem:[%s261_s1 + $0x18] sm:$0xff]   ;;  %v209_v5 = vld [vmem:[%s261_s1 + $0x20] sm:$0xff]   ;;  %v210_v6 = vld [vmem:[%s261_s1 + $0x28] sm:$0xff]  }
   0x3   :  { %185 = vmatprep.subr.bf16.mxu0 %v214_v0  ;;  %v211_v7 = vld [vmem:[%s261_s1 + $0x30] sm:$0xff]   ;;  %v212_v8 = vld [vmem:[%s261_s1 + $0x38] sm:$0xff]   ;;  %v213_v9 = vld [vmem:[%s262_s0] sm:$0xff]  }
   0x6   :  { %186 = vmatpush3.bf16.msra.mxu0 %v206_v2 }
   0x7   :  { %187 = vmatprep.subr.bf16.mxu0 %v214_v0 }
   0xa   :  { %188 = vmatpush3.bf16.msra.mxu0 %v207_v3 }
   0xb   :  { %189 = vmatprep.subr.bf16.mxu0 %v214_v0 }
   0xe   :  { %190 = vmatpush3.bf16.msra.mxu0 %v208_v4 }
   0xf   :  { %191 = vmatprep.subr.bf16.mxu0 %v214_v0 }
  0x12   :  { %192 = vmatpush3.bf16.msra.mxu0 %v209_v5 }
  0x13   :  { %193 = vmatprep.subr.bf16.mxu0 %v214_v0 }
  0x16   :  { %194 = vmatpush3.bf16.msra.mxu0 %v210_v6 }
  0x17   :  { %195 = vmatprep.subr.bf16.mxu0 %v214_v0 }
  0x1a   :  { %196 = vmatpush3.bf16.msra.mxu0 %v211_v7 }
  0x1b   :  { %197 = vmatprep.subr.bf16.mxu0 %v214_v0 }
  0x1e   :  { %198 = vmatpush3.bf16.msra.mxu0 %v212_v8 }
  0x21   :  { %200 = vmatmul.mubr.bf16.vlgmr.msra.gmra.mrb[0].mxu0 %v213_v9 }
  0xf4   :  { %v126_v10 = vpop.f32.mrb[0].mxu0 }
  0xf5   :  { %v201_v11 = vpop.f32.mrb[1].mxu0 }
  0xf6   :  { %v129_v12 = vpop.f32.mrb[2].mxu0 }
  0xf7   :  { %v172_v13 = vpack.c.bf16 %v129_v12, %v126_v10  ;;  %v202_v14 = vpop.f32.mrb[3].mxu0 }
  0xf9   :  { %173 = vst [vmem:[%s263_s2] sm:$0xff] %v172_v13  }

// kernel: cross_attention_forward.7
= control target key start
LH: loop header
LB: loop body
LE: loop exit
PB: predicated region body
PF: predicated region fallthrough
CT: control target
= control target key end

     0   :  { %s349_s0 = inlined_call_operand.vmem [shape: bf16[32,128], index: 0, kind: input, shape index: {}]   ;;  %s350_s1 = inlined_call_operand.vmem [shape: bf16[128,128], index: 1, kind: input, shape index: {}]   ;;  %s351_s2 = inlined_call_operand.vmem [shape: f32[1,128], index: 2, kind: input, shape index: {}]   ;;  %s352_s3 = inlined_call_operand.hbm [shape: f32[32,128], index: 3, kind: output, shape index: {}]  }
   0x1   :  { %v247_v0 = vld [vmem:[%s350_s1] sm:$0xff]   ;;  %v248_v1 = vld [vmem:[%s350_s1 + $0x8] sm:$0xff]   ;;  %v249_v2 = vld [vmem:[%s350_s1 + $0x10] sm:$0xff]  }
   0x2   :  { %224 = vmatprep.subr.bf16.mxu0 %v247_v0  ;;  %v250_v3 = vld [vmem:[%s350_s1 + $0x18] sm:$0xff]   ;;  %v255_v4 = vld [vmem:[%s349_s0] sm:$0xff]  }
   0x3   :  { %225 = vmatpush3.bf16.msra.mxu0 %v247_v0  ;;  %240 = vmatprep.mubr.bf16.mxu0 %v255_v4 }
   0x4   :  { %226 = vmatprep.subr.bf16.mxu0 %v248_v1 }
   0x7   :  { %227 = vmatpush3.bf16.msra.mxu0 %v248_v1 }
   0x8   :  { %228 = vmatprep.subr.bf16.mxu0 %v249_v2 }
   0x9   :  { %8 = vsyncpa [#allocation4], 0  ;;  %v251_v5 = vld [vmem:[%s350_s1 + $0x20] sm:$0xff]   ;;  %v252_v6 = vld [vmem:[%s350_s1 + $0x28] sm:$0xff]   ;;  %s281_s7 = smov [#allocation3]  }
   0xa   :  { %v253_v7 = vld [vmem:[%s350_s1 + $0x30] sm:$0xff]   ;;  %v254_v8 = vld [vmem:[%s350_s1 + $0x38] sm:$0xff]   ;;  %v256_v9 = vld [vmem:[%s349_s0 + $0x8] sm:$0xff]   ;;  %s192_s8 = sshll.u32 %s281_s7, 4  ;;  %s193_s8 = int_to_ptr.vmem [resolvable:$true] %s192_s8 }
   0xb   :  { %229 = vmatpush3.bf16.msra.mxu0 %v249_v2  ;;  %v213_v10 = vld [vmem:[%s351_s2] ss:$0 sm:$0xff]  ;;  %s257_s0 = scalar_lea.vmem %s193_s8, 512  ;;  %p262_p1 = scmp.lt.s32.totalorder %s193_s8, %s193_s8 }
   0xc   :  { %230 = vmatprep.subr.bf16.mxu0 %v250_v3  ;;  %p258_p0 = scmp.ne.s32.totalorder %s193_s8, %s257_s0  ;;  %p263_p2 = scmp.lt.s32.totalorder %s257_s0, %s257_s0 }
   0xe   :  { %p264_p3 = por %p263_p2, %p262_p1 }
   0xf   :  { %231 = vmatpush3.bf16.msra.mxu0 %v250_v3 }
  0x10   :  { %232 = vmatprep.subr.bf16.mxu0 %v251_v5  ;;  %p265_p4 = pnand %p264_p3, %p258_p0 }
  0x13   :  { %233 = vmatpush3.bf16.msra.mxu0 %v251_v5 }
  0x14   :  { %234 = vmatprep.subr.bf16.mxu0 %v252_v6 }
  0x17   :  { %235 = vmatpush3.bf16.msra.mxu0 %v252_v6 }
  0x18   :  { %236 = vmatprep.subr.bf16.mxu0 %v253_v7 }
  0x1b   :  { %237 = vmatpush3.bf16.msra.mxu0 %v253_v7 }
  0x1c   :  { %238 = vmatprep.subr.bf16.mxu0 %v254_v8 }
  0x1f   :  { %239 = vmatpush3.bf16.msra.mxu0 %v254_v8 }
  0x22   :  { %241 = vmatmul.mubr.bf16.vlgmr.msra.gmra.mrb[0].mxu0 %v256_v9 }
  0xf5   :  { %v242_v11 = vpop.f32.mrb[0].mxu0 }
  0xf6   :  { %v181_v12 = vadd.f32 %v242_v11, %v213_v10  ;;  %v142_v13 = vpop.f32.mrb[1].mxu0 }
  0xf7   :  { %v179_v14 = vadd.f32 %v213_v10, %v142_v13  ;;  %v243_v15 = vpop.f32.mrb[2].mxu0 }
  0xf8   :  { %185 = vst [vmem:[#allocation3 + $0x10] sm:$0xff] %v181_v12  ;;  %v182_v16 = vadd.f32 %v243_v15, %v213_v10  ;;  %v145_v17 = vpop.f32.mrb[3].mxu0 }
  0xf9   :  { %183 = vst [vmem:[#allocation3] sm:$0xff] %v179_v14  ;;  %v180_v18 = vadd.f32 %v213_v10, %v145_v17 }
  0xfa   :  { %186 = vst [vmem:[#allocation3 + $0x18] sm:$0xff] %v182_v16 }
  0xfb   :  { %184 = vst [vmem:[#allocation3 + $0x8] sm:$0xff] %v180_v18 }
  0xfc   :  { %268 = shalt.err (!%p265_p4)
}
  0xfd   :  { %s269_s9 = scalar_lea.hbm %s352_s3, 512 }
  0xfe   :  { %p270_p5 = scmp.ne.s32.totalorder %s352_s3, %s269_s9  ;;  %p273_p6 = scmp.lt.u32.totalorder %s269_s9, %s352_s3 }
 0x100   :  { %p275_p7 = pnand %p273_p6, %p270_p5 }
 0x102   :  { %278 = shalt.err (!%p275_p7)
}
 0x103   :  { %s282_s14 = smov 128   ;;  %s283_s15 = smov 8  }
 0x104   :  { %198 = dma.vmem_to_hbm [thread:$0]  %s193_s8, 512, %s352_s3, [#allocation4], %s282_s14, %s282_s14, %s283_s15  }
 0x105   :  { %279 = dma.done.wait [#allocation4], 512  }
 0x106   :  { %280 = vsyncadd [#allocation4], 4294966784 }
 0x107   :  { %202 = vsyncpa [#allocation4], 1 }

// kernel: cross_attention_forward.6
= control target key start
LH: loop header
LB: loop body
LE: loop exit
PB: predicated region body
PF: predicated region fallthrough
CT: control target
= control target key end

     0   :  { %s651_s9 = smov 0   ;;  %s699_s0 = inlined_call_operand.vmem [shape: bf16[2,16,32], index: 0, kind: input, shape index: {}]   ;;  %s700_s1 = inlined_call_operand.vmem [shape: bf16[2,8,64], index: 1, kind: input, shape index: {}]   ;;  %s701_s2 = inlined_call_operand.vmem [shape: bf16[2,16,32], index: 2, kind: output, shape index: {}]  }
   0x1 LB: > { %s526_s10 = sadd.s32 4294967295, %s628_s9   ;;  %p530_p0 = scmp.ge.s32.totalorder %s628_s9, 1  ;;  %s628_s9 = sphi %s651_s9, %s12_s9  }
   0x2   : > { %p121_p1 = scmp.lt.s32.totalorder %s628_s9, 3 }
   0x4   : > { %p122_p2 = pnand %p530_p0, %p121_p1 }
   0x5   : > { %p147_p3 = scmp.lt.s32.totalorder (!%p122_p2), %s526_s10, 1  ;;  %v630_v0 = vmov (!%p122_p2), 0.0   ;;  %vm631_vm0 = vmmov (!%p122_p2), 0   ;;  %vm170_vm1 = vcmask (!%p122_p2), 130048   ;;  %s632_s19 = smov (!%p122_p2), 96   ;;  %vm220_vm2 = vcmask (!%p122_p2), 64512  }
   0x6   : > { %125 = sbr.rel (%p122_p2) target bundleno = 1123 (0x463), region = 28  ;;  %564 = vmatprep.subr.bf16.mxu0 (!%p122_p2), %v630_v0  ;;  %566 = vmatprep.mubr.msk.bf16.mxu0 (!%p122_p2), %vm631_vm0, %v630_v0  ;;  %s633_s20 = smov (!%p122_p2), 112   ;;  %vm248_vm3 = vcmask (!%p122_p2), 1043456   ;;  %vm305_vm4 = vcmask (!%p122_p2), 125952   ;;  %vm456_vm5 = vcmask (!%p122_p2), 257152  }
   0x7   : > { %570 = vmatprep.subr.bf16.mxu1 (!%p122_p2), %v630_v0  ;;  %572 = vmatprep.mubr.msk.bf16.mxu1 (!%p122_p2), %vm631_vm0, %v630_v0  ;;  %s634_s21 = smov (!%p122_p2), 80   ;;  %s635_s25 = smov (!%p122_p2), 16  }
   0xd   : > { %s703_s10 = smov (!%p147_p3, %s526_s10), 1 }
   0xe   : > { %s550_s11 = sshll.u32 %s703_s10, 3  ;;  %s533_s12 = sshll.u32 %s703_s10, 2 }
   0xf   : > { %s155_s15 = scalar_lea.vmem %s700_s1, %s533_s12  ;;  %s151_s18 = scalar_lea.vmem %s699_s0, %s550_s11 }
  0x10   : > { %v164_v1 = vld [vmem:[%s155_s15] sm:$0xf]  ;;  %s160_s24 = scalar_lea.vmem %s701_s2, %s550_s11 }
  0x11   : > { %v175_v2 = vsel %vm170_vm1, %v164_v1, 0  ;;  %v603_v3 = vld [vmem:[%s151_s18] sm:$0xff]   ;;  %v538_v4 = vcombine.low %v164_v1, %v164_v1 }
  0x12   : > { %565 = vmatpush3.bf16.xpose.msra.mxu0 %v175_v2  ;;  %v602_v5 = vld [vmem:[%s155_s15] ss:$0 sps:$4 sm:$0xff]  }
  0x13   : > { %582 = vmatprep.subr.bf16.mxu0 %v630_v0  ;;  %243 = vrot.lane.b32.xlu1 %v538_v4, %s632_s19  ;;  %v605_v14 = vld [vmem:[%s151_s18] sm:$0xff]  }
  0x17   : > { %321 = vrot.lane.b32.xlu1 %v602_v5, %s633_s20 }
  0x19   : > { %567 = vmatmul.mubr.msk.bf16.vlgmr.msra.gmra.mrb[0].mxu0 %vm170_vm1, %v603_v3 }
  0x1a   : > { %584 = vmatprep.mubr.msk.bf16.mxu0 %vm631_vm0, %v630_v0 }
  0x85   : > { %v244_v15 = vpop.permute.xlu1 %243 }
  0x86   : > { %v250_v16 = vsel %vm248_vm3, %v244_v15, 0 }
  0x87   : > { %571 = vmatpush3.bf16.msra.mxu1 %v250_v16 }
  0x88   : > { %576 = vmatprep.subr.bf16.mxu1 %v630_v0 }
  0x89   : > { %v322_v23 = vpop.permute.xlu1 %321 }
  0x8a   : > { %v327_v26 = vsel %vm170_vm1, %v322_v23, 0 }
  0xec   : > { %v211_v6 = vpop.f32.mrb[0].mxu0 }
  0xed   : > { %v218_v7 = vmul.f32 0.25, %v211_v6  ;;  %v568_v8 = vpop.f32.mrb[1].mxu0 }
  0xee   : > { %v214_v9 = vpop.f32.mrb[2].mxu0 }
  0xef   : > { %v219_v10 = vmul.f32 0.25, %v214_v9  ;;  %v569_v11 = vpop.f32.mrb[3].mxu0  ;;  %v221_v12 = vsel %vm220_vm2, %v218_v7, -inf }
  0xf0   : > { %222 = vmax.xlane.f32.xlu0 %v221_v12 }
  0xf1   : > { %v224_v13 = vsel %vm220_vm2, %v219_v10, -inf }
  0xf4   : > { %225 = vmax.xlane.f32.xlu0 %v224_v13 }
 0x10a   : > { %316 = vrot.lane.b32.xlu0 %v605_v14, %s633_s20 }
 0x17d   : > { %v223_v17 = vpop.xlane.xlu0 %222 }
 0x17e   : > { %v227_v18 = vsub.f32 %v218_v7, %v223_v17 }
 0x180   : > { %v229_v19 = vmul.f32 1.442695, %v227_v18 }
 0x181   : > { %v226_v20 = vpop.xlane.xlu0 %225 }
 0x182   : > { %v228_v21 = vsub.f32 %v219_v10, %v226_v20  ;;  %606 = vpow2.f32 %v229_v19 }
 0x184   : > { %v231_v22 = vmul.f32 1.442695, %v228_v21 }
 0x185   : > { %v317_v28 = vpop.permute.xlu0 %316 }
 0x186   : > { %608 = vpow2.f32 %v231_v22 }
 0x18c   : > { %v607_v24 = vpop.eup %606 }
 0x18d   : > { %v233_v54 = vsel %vm220_vm2, %v607_v24, 0.0 }
 0x190   : > { %v609_v25 = vpop.eup %608 }
 0x191   : > { %v239_v27 = vpack.c.bf16 %v609_v25, %v607_v24  ;;  %v236_v55 = vsel %vm220_vm2, %v609_v25, 0.0 }
 0x193   : > { %573 = vmatmul.mubr.msk.bf16.vlgmr.msra.gmra.mrb[0].mxu1 %vm220_vm2, %v239_v27 }
 0x194   : > { %577 = vmatpush3.bf16.xpose.msra.mxu1 %v327_v26  ;;  %578 = vmatprep.mubr.msk.bf16.mxu1 %vm631_vm0, %v630_v0 }
 0x19b   : > { %579 = vmatmul.mubr.msk.bf16.vlgmr.msra.gmra.mrb[4].mxu1 %vm170_vm1, %v317_v28 }
 0x266   : > { %v286_v29 = vpop.f32.mrb[0].mxu1 }
 0x267   : > { %v574_v30 = vpop.f32.mrb[1].mxu1 }
 0x268   : > { %v289_v31 = vpop.f32.mrb[2].mxu1 }
 0x269   : > { %v575_v32 = vpop.f32.mrb[3].mxu1 }
 0x26e   : > { %v363_v33 = vpop.f32.mrb[4].mxu1 }
 0x26f   : > { %v370_v34 = vmul.f32 0.25, %v363_v33  ;;  %v580_v35 = vpop.f32.mrb[5].mxu1 }
 0x270   : > { %v366_v36 = vpop.f32.mrb[6].mxu1 }
 0x271   : > { %v371_v37 = vmul.f32 0.25, %v366_v36  ;;  %v581_v38 = vpop.f32.mrb[7].mxu1  ;;  %v372_v39 = vsel %vm220_vm2, %v370_v34, -inf }
 0x272   : > { %373 = vmax.xlane.f32.xlu1 %v372_v39 }
 0x273   : > { %v375_v40 = vsel %vm220_vm2, %v371_v37, -inf }
 0x274   : > { %376 = vmax.xlane.f32.xlu0 %v375_v40 }
 0x283   : > { %391 = vrot.lane.b32.xlu1 %v602_v5, %s634_s21 }
 0x2ff   : > { %v374_v41 = vpop.xlane.xlu1 %373 }
 0x300   : > { %v378_v42 = vsub.f32 %v370_v34, %v374_v41 }
 0x301   : > { %v377_v43 = vpop.xlane.xlu0 %376 }
 0x302   : > { %v380_v44 = vmul.f32 1.442695, %v378_v42  ;;  %v379_v45 = vsub.f32 %v371_v37, %v377_v43 }
 0x303   : > { %v392_v46 = vpop.permute.xlu1 %391 }
 0x304   : > { %610 = vpow2.f32 %v380_v44  ;;  %v382_v47 = vmul.f32 1.442695, %v379_v45  ;;  %v397_v48 = vsel %vm248_vm3, %v392_v46, 0 }
 0x305   : > { %583 = vmatpush3.bf16.msra.mxu0 %v397_v48 }
 0x306   : > { %612 = vpow2.f32 %v382_v47 }
 0x30e   : > { %v611_v49 = vpop.eup %610 }
 0x30f   : > { %v384_v50 = vsel %vm220_vm2, %v611_v49, 0.0 }
 0x310   : > { %v613_v51 = vpop.eup %612  ;;  %385 = vadd.xlane.f32.xlu0 %v384_v50 }
 0x311   : > { %v387_v52 = vsel %vm220_vm2, %v613_v51, 0.0  ;;  %v390_v53 = vpack.c.bf16 %v613_v51, %v611_v49 }
 0x312   : > { %388 = vadd.xlane.f32.xlu1 %v387_v52 }
 0x313   : > { %585 = vmatmul.mubr.msk.bf16.vlgmr.msra.gmra.mrb[4].mxu0 %vm220_vm2, %v390_v53 }
 0x314   : > { %234 = vadd.xlane.f32.xlu0 %v233_v54 }
 0x318   : > { %237 = vadd.xlane.f32.xlu0 %v236_v55 }
 0x39d   : > { %v386_v56 = vpop.xlane.xlu0 %385 }
 0x39f   : > { %v389_v1 = vpop.xlane.xlu1 %388 }
 0x3a1   : > { %v235_v57 = vpop.xlane.xlu0 %234 }
 0x3a2   : > { %614 = vrcp.f32 %v235_v57 }
 0x3a5   : > { %v238_v58 = vpop.xlane.xlu0 %237 }
 0x3a6   : > { %616 = vrcp.f32 %v238_v58 }
 0x3a7   : > { %618 = vrcp.f32 %v386_v56 }
 0x3a8   : > { %620 = vrcp.f32 %v389_v1 }
 0x3ac   : > { %v615_v59 = vpop.eup %614 }
 0x3ad   : > { %v295_v60 = vmul.f32 %v615_v59, %v286_v29 }
 0x3af   : > { %v552_v61 = vpack.c.bf16 %v295_v60, %v295_v60 }
 0x3b0   : > { %v617_v62 = vpop.eup %616 }
 0x3b1   : > { %v296_v63 = vmul.f32 %v617_v62, %v289_v31  ;;  %306 = vst.msk [vmem:[%s160_s24] sm:$0xf] %vm305_vm4, %v552_v61  ;;  %v619_v2 = vpop.eup %618 }
 0x3b2   : > { %v621_v6 = vpop.eup %620 }
 0x3b3   : > { %v553_v0 = vpack.c.bf16 %v296_v63, %v296_v63 }
 0x3b5   : > { %307 = vst.msk [vmem:[%s160_s24 + $0x4] sm:$0xf] %vm305_vm4, %v553_v0 }
 0x3e6   : > { %v433_v3 = vpop.f32.mrb[4].mxu0 }
 0x3e7   : > { %v442_v4 = vmul.f32 %v619_v2, %v433_v3  ;;  %v586_v5 = vpop.f32.mrb[5].mxu0 }
 0x3e8   : > { %v436_v7 = vpop.f32.mrb[6].mxu0 }
 0x3e9   : > { %v554_v8 = vpack.c.bf16 %v442_v4, %v442_v4  ;;  %v443_v9 = vmul.f32 %v621_v6, %v436_v7  ;;  %v587_v10 = vpop.f32.mrb[7].mxu0 }
 0x3eb   : > { %450 = vrot.lane.b32.xlu0 %v554_v8, %s635_s25  ;;  %v555_v11 = vpack.c.bf16 %v443_v9, %v443_v9 }
 0x3ef   : > { %452 = vrot.lane.b32.xlu0 %v555_v11, %s635_s25 }
 0x45d   : > { %v451_v12 = vpop.permute.xlu0 %450 }
 0x45e   : > { %457 = vst.msk [vmem:[%s160_s24] sm:$0xf] %vm456_vm5, %v451_v12 }
 0x461   : > { %v453_v13 = vpop.permute.xlu0 %452 }
 0x462   : > { %458 = vst.msk [vmem:[%s160_s24 + $0x4] sm:$0xf] %vm456_vm5, %v453_v13 }
 0x463 PF: > { %s12_s9 = sadd.s32 1, %s628_s9  }
 0x464   : > { %p9_p4 = scmp.ge.s32.totalorder %s12_s9, 4  }
 0x466   :  { %11 = sbr.rel (!%p9_p4) target bundleno = 1 (0x1), region = 61 }

</bundles_post_ra>
